<compile_context>
chip_gen: v7x
topology: tpu7x:2x2x1
jax: 0.10.0
libtpu: 0.0.40
codegen_flags: <defaults>
</compile_context>

<pallas_src>
import math
import functools

import jax
import jax.numpy as jnp
from jax.experimental import pallas as pl
from jax.experimental.pallas import tpu as pltpu


_LANE = 128          # vreg lane width (last dim)
_SUBLANE_BF16 = 16   # bf16-packed sublane height (second-to-last dim)
_TILE_N_TARGET = 1024


def _round_up(n, m):
    return (n + m - 1) // m * m


def _pick_tile_n(padded_n, target=_TILE_N_TARGET):
    """Largest multiple of 128 that divides padded_n and is <= target."""
    best = _LANE
    for cand in range(_LANE, min(padded_n, target) + 1, _LANE):
        if padded_n % cand == 0:
            best = cand
    return best


def _silu(x):
    return x * jax.nn.sigmoid(x)


def time_embedding_kernel(t_ref, freqs_ref, phase_ref,
                          w1_ref, b1_ref,
                          w2_ref, b2_ref,
                          w3_ref, b3_ref,
                          out_ref,
                          a_ref):
    """Fused TimeEmbedding forward; grid axis 0 tiles the w3 output columns."""

    @pl.when(pl.program_id(0) == 0)
    def _compute_activation():
        t = t_ref[...]                                       # (Bp, 1)  f32
        # Sinusoidal embedding without concatenate:
        #   [cos(args) | sin(args)] == sin(t * [freqs|freqs] + [pi/2|0])
        # Padded lanes have freqs == 0 and phase == 0 -> sin(0) == 0.
        emb = jnp.sin(t * freqs_ref[...] + phase_ref[...])   # (Bp, Fp) f32

        # TimestepEmbedding: linear_1 -> SiLU -> linear_2 (bf16 MXU, f32 acc)
        h = jnp.dot(emb.astype(w1_ref.dtype), w1_ref[...],
                    preferred_element_type=jnp.float32) + b1_ref[...]
        h = _silu(h)
        temb = jnp.dot(h.astype(w2_ref.dtype), w2_ref[...],
                       preferred_element_type=jnp.float32) + b2_ref[...]
        # act_fn(SiLU) before time_proj; carried across grid steps in VMEM.
        a_ref[...] = _silu(temb)                             # (Bp, Dp) f32

    # Per-tile time_proj linear: the only work (and the only moving HBM
    # bytes) on steps j > 0.
    a = a_ref[...]
    out_ref[...] = jnp.dot(a.astype(w3_ref.dtype), w3_ref[...],
                           preferred_element_type=jnp.float32) + b3_ref[...]


def make_params(key, dim, time_freq_dim, time_proj_dim, w_dtype=jnp.bfloat16):
    """Deterministic synthetic parameters (same logical shapes as the module).

    Weights are stored pre-transposed ([in_features, out_features]) and in
    bf16; biases stay f32.
    """
    ks = jax.random.split(key, 6)
    scale = 0.02
    w1 = (jax.random.normal(ks[0], (time_freq_dim, dim), jnp.float32) * scale).astype(w_dtype)
    b1 = jax.random.normal(ks[1], (dim,), jnp.float32) * scale
    w2 = (jax.random.normal(ks[2], (dim, dim), jnp.float32) * scale).astype(w_dtype)
    b2 = jax.random.normal(ks[3], (dim,), jnp.float32) * scale
    w3 = (jax.random.normal(ks[4], (dim, time_proj_dim), jnp.float32) * scale).astype(w_dtype)
    b3 = jax.random.normal(ks[5], (time_proj_dim,), jnp.float32) * scale
    return w1, b1, w2, b2, w3, b3


def _pad2d(x, rows, cols):
    return jnp.pad(x, ((0, rows - x.shape[0]), (0, cols - x.shape[1])))


def prepare_inputs(params, time_freq_dim, dim, time_proj_dim,
                   max_period=10000.0, downscale_freq_shift=0.0):
    """One-time prep: fused freq/phase rows + zero-padding to lane-dense shapes.

    time_freq_dim is assumed even (it is in the WAN configs)."""
    w1, b1, w2, b2, w3, b3 = params
    Fp = _round_up(time_freq_dim, _LANE)
    Dp = _round_up(dim, _LANE)
    Pp = _round_up(time_proj_dim, _LANE)

    half = time_freq_dim // 2
    exponent = -math.log(max_period) * jnp.arange(half, dtype=jnp.float32)
    exponent = exponent / (half - downscale_freq_shift)
    base = jnp.exp(exponent)                                  # (half,)

    freqs_full = jnp.zeros((1, Fp), jnp.float32)
    freqs_full = freqs_full.at[0, :half].set(base)            # cos block
    freqs_full = freqs_full.at[0, half:2 * half].set(base)    # sin block
    phase = jnp.zeros((1, Fp), jnp.float32)
    phase = phase.at[0, :half].set(jnp.pi / 2.0)              # cos(x)=sin(x+pi/2)

    w1p = _pad2d(w1, Fp, Dp)
    b1p = _pad2d(b1.reshape(1, -1), 1, Dp)
    w2p = _pad2d(w2, Dp, Dp)
    b2p = _pad2d(b2.reshape(1, -1), 1, Dp)
    w3p = _pad2d(w3, Dp, Pp)
    b3p = _pad2d(b3.reshape(1, -1), 1, Pp)
    return (freqs_full, phase, w1p, b1p, w2p, b2p, w3p, b3p)


def _vmem_limit_bytes(Bp, Fp, Dp, tile_n):
    """Scoped-VMEM budget: 2x double-buffered blocks + scratch + headroom."""
    f32, bf16 = 4, 2
    resident = (Bp * 1 * f32            # t
                + 2 * Fp * f32          # freqs + phase
                + Fp * Dp * bf16        # w1
                + Dp * f32              # b1
                + Dp * Dp * bf16        # w2
                + Dp * f32)             # b2
    per_tile = (Dp * tile_n * bf16      # w3 tile
                + tile_n * f32          # b3 tile
                + Bp * tile_n * f32)    # out tile
    scratch = Bp * Dp * f32
    total = 2 * (resident + per_tile) + scratch + (4 << 20)
    return int(min(max(total, 16 << 20), 100 << 20))


@functools.partial(jax.jit, static_argnames=("time_proj_dim",))
def time_embedding(timestep, padded, time_proj_dim):
    """timestep: (B,) float. Returns (B, time_proj_dim) float32."""
    freqs_full, phase, w1p, b1p, w2p, b2p, w3p, b3p = padded
    B = timestep.shape[0]
    Bp = _round_up(B, _SUBLANE_BF16)          # bf16 vregs pack [16, 128]
    Fp = freqs_full.shape[1]
    Dp = w2p.shape[1]
    Pp = w3p.shape[1]
    tile_n = _pick_tile_n(Pp)
    n_tiles = Pp // tile_n

    # TODO(synk): fold this pad/set and the final slice into the consumer when
    # this op gets fused downstream; padded rows see t=0 (emb != 0) and are
    # only correct because we slice them off here.
    t2d = jnp.zeros((Bp, 1), jnp.float32).at[:B, 0].set(
        timestep.astype(jnp.float32))

    const = lambda j: (0, 0)                  # resident across all N tiles
    grid_spec = pltpu.PrefetchScalarGridSpec(
        num_scalar_prefetch=0,
        grid=(n_tiles,),
        in_specs=[
            pl.BlockSpec((Bp, 1), const),         # t
            pl.BlockSpec((1, Fp), const),         # freqs
            pl.BlockSpec((1, Fp), const),         # phase
            pl.BlockSpec((Fp, Dp), const),        # w1
            pl.BlockSpec((1, Dp), const),         # b1
            pl.BlockSpec((Dp, Dp), const),        # w2
            pl.BlockSpec((1, Dp), const),         # b2
            pl.BlockSpec((Dp, tile_n), lambda j: (0, j)),   # w3 tile
            pl.BlockSpec((1, tile_n), lambda j: (0, j)),    # b3 tile
        ],
        out_specs=pl.BlockSpec((Bp, tile_n), lambda j: (0, j)),
        scratch_shapes=[pltpu.VMEM((Bp, Dp), jnp.float32)],  # silu(temb)
    )

    out = pl.pallas_call(
        time_embedding_kernel,
        out_shape=jax.ShapeDtypeStruct((Bp, Pp), jnp.float32),
        grid_spec=grid_spec,
        compiler_params=pltpu.CompilerParams(
            # "arbitrary": the scratch is written only at program_id==0, so
            # this axis must stay on one core (see TODO at top for v7x).
            dimension_semantics=("arbitrary",),
            vmem_limit_bytes=_vmem_limit_bytes(Bp, Fp, Dp, tile_n),
        ),
    )(t2d, freqs_full, phase, w1p, b1p, w2p, b2p, w3p, b3p)

    return out[:B, :time_proj_dim]


def time_embedding_ref(timestep, params, time_freq_dim,
                       max_period=10000.0, downscale_freq_shift=0.0):
    """Pure-JAX reference matching the PyTorch module with bf16 linear params."""
    w1, b1, w2, b2, w3, b3 = params
    half = time_freq_dim // 2
    exponent = -math.log(max_period) * jnp.arange(half, dtype=jnp.float32)
    exponent = exponent / (half - downscale_freq_shift)
    freqs = jnp.exp(exponent)[None, :]
    args = timestep.astype(jnp.float32)[:, None] * freqs
    emb = jnp.concatenate([jnp.cos(args), jnp.sin(args)], axis=-1)  # flip_sin_to_cos

    def linear(x, w, b):
        return jnp.dot(x.astype(w.dtype), w,
                       preferred_element_type=jnp.float32) + b

    h = _silu(linear(emb, w1, b1))
    temb = linear(h, w2, b2)
    return linear(_silu(temb), w3, b3)


if __name__ == "__main__":
    # Small shapes consistent with the module's forward.
    B = 4
    dim = 64
    time_freq_dim = 32
    time_proj_dim = 96

    key = jax.random.PRNGKey(0)
    kp, kt = jax.random.split(key)
    params = make_params(kp, dim, time_freq_dim, time_proj_dim)
    padded = prepare_inputs(params, time_freq_dim, dim, time_proj_dim)

    # timestep is a 1-D tensor of (float) diffusion timesteps, e.g. in [0, 1000)
    timestep = jax.random.uniform(kt, (B,), minval=0.0, maxval=1000.0)

    out = time_embedding(timestep, padded, time_proj_dim)
    out = jax.block_until_ready(out)

    ref = time_embedding_ref(timestep, params, time_freq_dim)
    assert out.shape == (B, time_proj_dim)
    # bf16 weights/activation casts in both paths; small slack for the
    # sin(x + pi/2) == cos(x) rewrite under f32 argument rounding.
    assert jnp.allclose(out, ref, atol=1e-3, rtol=1e-3), "mismatch vs reference"

    print("KERNEL_OK")
</pallas_src>

<mosaic_0001>
module attributes {stable_mosaic.version = 11 : i64} {
  func.func @time_embedding_kernel(%arg0: i32, %arg1: memref<16x1xf32, #tpu.memory_space<vmem>>, %arg2: memref<1x128xf32, #tpu.memory_space<vmem>>, %arg3: memref<1x128xf32, #tpu.memory_space<vmem>>, %arg4: memref<128x128xbf16, #tpu.memory_space<vmem>>, %arg5: memref<1x128xf32, #tpu.memory_space<vmem>>, %arg6: memref<128x128xbf16, #tpu.memory_space<vmem>>, %arg7: memref<1x128xf32, #tpu.memory_space<vmem>>, %arg8: memref<128x128xbf16, #tpu.memory_space<vmem>>, %arg9: memref<1x128xf32, #tpu.memory_space<vmem>>, %arg10: memref<16x128xf32, #tpu.memory_space<vmem>>, %arg11: memref<16x128xf32, #tpu.memory_space<vmem>>) attributes {dimension_semantics = [#tpu.dimension_semantics<arbitrary>], iteration_bounds = array<i64: 1>, scalar_prefetch = 0 : i64, scratch_operands = 1 : i64, tpu.core_type = #tpu.core_type<tc>, window_params = [{pipeline_mode = #tpu.pipeline_mode<synchronous>, transform_indices = @transform_0, window_bounds = array<i64: 16, 1>}, {pipeline_mode = #tpu.pipeline_mode<synchronous>, transform_indices = @transform_1, window_bounds = array<i64: 1, 128>}, {pipeline_mode = #tpu.pipeline_mode<synchronous>, transform_indices = @transform_2, window_bounds = array<i64: 1, 128>}, {pipeline_mode = #tpu.pipeline_mode<synchronous>, transform_indices = @transform_3, window_bounds = array<i64: 128, 128>}, {pipeline_mode = #tpu.pipeline_mode<synchronous>, transform_indices = @transform_4, window_bounds = array<i64: 1, 128>}, {pipeline_mode = #tpu.pipeline_mode<synchronous>, transform_indices = @transform_5, window_bounds = array<i64: 128, 128>}, {pipeline_mode = #tpu.pipeline_mode<synchronous>, transform_indices = @transform_6, window_bounds = array<i64: 1, 128>}, {transform_indices = @transform_7, window_bounds = array<i64: 128, 128>}, {transform_indices = @transform_8, window_bounds = array<i64: 1, 128>}, {transform_indices = @transform_9, window_bounds = array<i64: 16, 128>}]} {
    %c0_i32 = arith.constant 0 : i32
    %0 = arith.cmpi eq, %arg0, %c0_i32 : i32
    %1 = arith.extui %0 : i1 to i32
    %c0_i32_0 = arith.constant 0 : i32
    %2 = arith.cmpi ne, %1, %c0_i32_0 : i32
    scf.if %2 {
      %c0_8 = arith.constant 0 : index
      %c0_9 = arith.constant 0 : index
      %11 = vector.load %arg1[%c0_8, %c0_9] : memref<16x1xf32, #tpu.memory_space<vmem>>, vector<16x1xf32>
      %c0_10 = arith.constant 0 : index
      %c0_11 = arith.constant 0 : index
      %12 = vector.load %arg2[%c0_10, %c0_11] : memref<1x128xf32, #tpu.memory_space<vmem>>, vector<1x128xf32>
      %13 = vector.broadcast %11 : vector<16x1xf32> to vector<16x128xf32>
      %14 = vector.broadcast %12 : vector<1x128xf32> to vector<16x128xf32>
      %15 = arith.mulf %13, %14 : vector<16x128xf32>
      %c0_12 = arith.constant 0 : index
      %c0_13 = arith.constant 0 : index
      %16 = vector.load %arg3[%c0_12, %c0_13] : memref<1x128xf32, #tpu.memory_space<vmem>>, vector<1x128xf32>
      %17 = vector.broadcast %16 : vector<1x128xf32> to vector<16x128xf32>
      %18 = arith.addf %15, %17 : vector<16x128xf32>
      %19 = math.sin %18 : vector<16x128xf32>
      %20 = arith.truncf %19 : vector<16x128xf32> to vector<16x128xbf16>
      %c0_14 = arith.constant 0 : index
      %c0_15 = arith.constant 0 : index
      %21 = vector.load %arg4[%c0_14, %c0_15] : memref<128x128xbf16, #tpu.memory_space<vmem>>, vector<128x128xbf16>
      %cst_16 = arith.constant dense<0.000000e+00> : vector<16x128xf32>
      %22 = tpu.matmul %20, %21, %cst_16 {dimension_numbers = #tpu.dot_dimension_numbers<[1], [0], [0], [1], [0, 0, 1, 1], [], []>} : vector<16x128xbf16>, vector<128x128xbf16>, vector<16x128xf32> -> vector<16x128xf32>
      %c0_17 = arith.constant 0 : index
      %c0_18 = arith.constant 0 : index
      %23 = vector.load %arg5[%c0_17, %c0_18] : memref<1x128xf32, #tpu.memory_space<vmem>>, vector<1x128xf32>
      %24 = vector.broadcast %23 : vector<1x128xf32> to vector<16x128xf32>
      %25 = arith.addf %22, %24 : vector<16x128xf32>
      %26 = arith.negf %25 : vector<16x128xf32>
      %27 = math.exp %26 : vector<16x128xf32>
      %cst_19 = arith.constant 1.000000e+00 : f32
      %28 = vector.broadcast %cst_19 : f32 to vector<16x128xf32>
      %29 = arith.addf %28, %27 : vector<16x128xf32>
      %30 = arith.divf %28, %29 : vector<16x128xf32>
      %31 = arith.mulf %25, %30 : vector<16x128xf32>
      %32 = arith.truncf %31 : vector<16x128xf32> to vector<16x128xbf16>
      %c0_20 = arith.constant 0 : index
      %c0_21 = arith.constant 0 : index
      %33 = vector.load %arg6[%c0_20, %c0_21] : memref<128x128xbf16, #tpu.memory_space<vmem>>, vector<128x128xbf16>
      %cst_22 = arith.constant dense<0.000000e+00> : vector<16x128xf32>
      %34 = tpu.matmul %32, %33, %cst_22 {dimension_numbers = #tpu.dot_dimension_numbers<[1], [0], [0], [1], [0, 0, 1, 1], [], []>} : vector<16x128xbf16>, vector<128x128xbf16>, vector<16x128xf32> -> vector<16x128xf32>
      %c0_23 = arith.constant 0 : index
      %c0_24 = arith.constant 0 : index
      %35 = vector.load %arg7[%c0_23, %c0_24] : memref<1x128xf32, #tpu.memory_space<vmem>>, vector<1x128xf32>
      %36 = vector.broadcast %35 : vector<1x128xf32> to vector<16x128xf32>
      %37 = arith.addf %34, %36 : vector<16x128xf32>
      %38 = arith.negf %37 : vector<16x128xf32>
      %39 = math.exp %38 : vector<16x128xf32>
      %cst_25 = arith.constant 1.000000e+00 : f32
      %40 = vector.broadcast %cst_25 : f32 to vector<16x128xf32>
      %41 = arith.addf %40, %39 : vector<16x128xf32>
      %42 = arith.divf %40, %41 : vector<16x128xf32>
      %43 = arith.mulf %37, %42 : vector<16x128xf32>
      %c0_26 = arith.constant 0 : index
      %c0_27 = arith.constant 0 : index
      %44 = vector.load %arg11[%c0_26, %c0_27] : memref<16x128xf32, #tpu.memory_space<vmem>>, vector<16x128xf32>
      tpu.vector_store %arg11[%c0_26, %c0_27], %43 {strides = array<i32>} : memref<16x128xf32, #tpu.memory_space<vmem>>, vector<16x128xf32>,
    } else {
    }
    %c0 = arith.constant 0 : index
    %c0_1 = arith.constant 0 : index
    %3 = vector.load %arg11[%c0, %c0_1] : memref<16x128xf32, #tpu.memory_space<vmem>>, vector<16x128xf32>
    %4 = arith.truncf %3 : vector<16x128xf32> to vector<16x128xbf16>
    %c0_2 = arith.constant 0 : index
    %c0_3 = arith.constant 0 : index
    %5 = vector.load %arg8[%c0_2, %c0_3] : memref<128x128xbf16, #tpu.memory_space<vmem>>, vector<128x128xbf16>
    %cst = arith.constant dense<0.000000e+00> : vector<16x128xf32>
    %6 = tpu.matmul %4, %5, %cst {dimension_numbers = #tpu.dot_dimension_numbers<[1], [0], [0], [1], [0, 0, 1, 1], [], []>} : vector<16x128xbf16>, vector<128x128xbf16>, vector<16x128xf32> -> vector<16x128xf32>
    %c0_4 = arith.constant 0 : index
    %c0_5 = arith.constant 0 : index
    %7 = vector.load %arg9[%c0_4, %c0_5] : memref<1x128xf32, #tpu.memory_space<vmem>>, vector<1x128xf32>
    %8 = vector.broadcast %7 : vector<1x128xf32> to vector<16x128xf32>
    %9 = arith.addf %6, %8 : vector<16x128xf32>
    %c0_6 = arith.constant 0 : index
    %c0_7 = arith.constant 0 : index
    %10 = vector.load %arg10[%c0_6, %c0_7] : memref<16x128xf32, #tpu.memory_space<vmem>>, vector<16x128xf32>
    tpu.vector_store %arg10[%c0_6, %c0_7], %9 {strides = array<i32>} : memref<16x128xf32, #tpu.memory_space<vmem>>, vector<16x128xf32>,
    return
  }
  func.func @transform_0(%arg0: i32) -> (i32, i32) {
    %c0_i32 = arith.constant 0 : i32
    %c0_i32_0 = arith.constant 0 : i32
    %c0_i32_1 = arith.constant 0 : i32
    return %c0_i32, %c0_i32_0 : i32, i32
  }
  func.func @transform_1(%arg0: i32) -> (i32, i32) {
    %c0_i32 = arith.constant 0 : i32
    %c0_i32_0 = arith.constant 0 : i32
    %c0_i32_1 = arith.constant 0 : i32
    return %c0_i32, %c0_i32_0 : i32, i32
  }
  func.func @transform_2(%arg0: i32) -> (i32, i32) {
    %c0_i32 = arith.constant 0 : i32
    %c0_i32_0 = arith.constant 0 : i32
    %c0_i32_1 = arith.constant 0 : i32
    return %c0_i32, %c0_i32_0 : i32, i32
  }
  func.func @transform_3(%arg0: i32) -> (i32, i32) {
    %c0_i32 = arith.constant 0 : i32
    %c0_i32_0 = arith.constant 0 : i32
    %c0_i32_1 = arith.constant 0 : i32
    return %c0_i32, %c0_i32_0 : i32, i32
  }
  func.func @transform_4(%arg0: i32) -> (i32, i32) {
    %c0_i32 = arith.constant 0 : i32
    %c0_i32_0 = arith.constant 0 : i32
    %c0_i32_1 = arith.constant 0 : i32
    return %c0_i32, %c0_i32_0 : i32, i32
  }
  func.func @transform_5(%arg0: i32) -> (i32, i32) {
    %c0_i32 = arith.constant 0 : i32
    %c0_i32_0 = arith.constant 0 : i32
    %c0_i32_1 = arith.constant 0 : i32
    return %c0_i32, %c0_i32_0 : i32, i32
  }
  func.func @transform_6(%arg0: i32) -> (i32, i32) {
    %c0_i32 = arith.constant 0 : i32
    %c0_i32_0 = arith.constant 0 : i32
    %c0_i32_1 = arith.constant 0 : i32
    return %c0_i32, %c0_i32_0 : i32, i32
  }
  func.func @transform_7(%arg0: i32) -> (i32, i32) {
    %c0_i32 = arith.constant 0 : i32
    %c0_i32_0 = arith.constant 0 : i32
    return %c0_i32, %arg0 : i32, i32
  }
  func.func @transform_8(%arg0: i32) -> (i32, i32) {
    %c0_i32 = arith.constant 0 : i32
    %c0_i32_0 = arith.constant 0 : i32
    return %c0_i32, %arg0 : i32, i32
  }
  func.func @transform_9(%arg0: i32) -> (i32, i32) {
    %c0_i32 = arith.constant 0 : i32
    %c0_i32_0 = arith.constant 0 : i32
    return %c0_i32, %arg0 : i32, i32
  }
}

</mosaic_0001>

<bundles_post_ra>
// kernel: time_embedding.1
= control target key start
LH: loop header
LB: loop body
LE: loop exit
PB: predicated region body
PF: predicated region fallthrough
CT: control target
= control target key end

     0   :  { %14 = vsyncpa [#allocation4], 0  ;;  %s1214_s0 = inlined_call_operand.vmem [shape: f32[16,1], index: 0, kind: input, shape index: {}]   ;;  %s1215_s1 = inlined_call_operand.vmem [shape: f32[1,128], index: 1, kind: input, shape index: {}]   ;;  %s1216_s2 = inlined_call_operand.vmem [shape: f32[1,128], index: 2, kind: input, shape index: {}]   ;;  %s1217_s3 = inlined_call_operand.hbm [shape: bf16[128,128], index: 3, kind: input, shape index: {}]   ;;  %s1218_s4 = inlined_call_operand.vmem [shape: f32[1,128], index: 4, kind: input, shape index: {}]   ;;  %s1219_s5 = inlined_call_operand.hbm [shape: bf16[128,128], index: 5, kind: input, shape index: {}]   ;;  %s1220_s6 = inlined_call_operand.vmem [shape: f32[1,128], index: 6, kind: input, shape index: {}]   ;;  %s1221_s7 = inlined_call_operand.hbm [shape: bf16[128,128], index: 7, kind: input, shape index: {}]   ;;  %s1222_s8 = inlined_call_operand.vmem [shape: f32[1,128], index: 8, kind: input, shape index: {}]   ;;  %s1223_s9 = inlined_call_operand.vmem [shape: f32[16,128], index: 9, kind: output, shape index: {}]  }
   0x1   :  { %15 = vsyncpa [#allocation6], 0  ;;  %s964_s30 = smov [#allocation5]   ;;  %s965_s11 = smov [#allocation3]  }
   0x2   :  { %s41_s10 = sshll.u32 %s964_s30, 4  ;;  %s27_s12 = sshll.u32 %s965_s11, 4  ;;  %s42_s10 = int_to_ptr.vmem [resolvable:$true] %s41_s10  ;;  %s1028_s12 = int_to_ptr.vmem [resolvable:$true] %s27_s12 }
   0x3   :  { %s894_s15 = scalar_lea.hbm %s1219_s5, 1024 }
   0x4   :  { %p895_p0 = scmp.ne.s32.totalorder %s1219_s5, %s894_s15  ;;  %p898_p1 = scmp.lt.u32.totalorder %s894_s15, %s1219_s5 }
   0x6   :  { %p900_p2 = pnand %p898_p1, %p895_p0 }
   0x8   :  { %903 = shalt.err (!%p900_p2)
}
   0x9   :  { %s904_s20 = scalar_lea.vmem %s42_s10, 1024  ;;  %p909_p4 = scmp.lt.s32.totalorder %s42_s10, %s42_s10 }
   0xa   :  { %p905_p3 = scmp.ne.s32.totalorder %s42_s10, %s904_s20  ;;  %p910_p5 = scmp.lt.s32.totalorder %s904_s20, %s904_s20 }
   0xc   :  { %p911_p6 = por %p910_p5, %p909_p4 }
   0xe   :  { %p912_p7 = pnand %p911_p6, %p905_p3 }
  0x10   :  { %915 = shalt.err (!%p912_p7)
}
  0x11   :  { %s966_s21 = smov 64   ;;  %s967_s22 = smov 4  }
  0x12   :  { %47 = dma.hbm_to_vmem [thread:$0]  %s1219_s5, 1024, %s42_s10, [#allocation6], %s966_s21, %s966_s21, %s967_s22  }
  0x13   :  { %s916_s27 = scalar_lea.hbm %s1217_s3, 1024 }
  0x14   :  { %p917_p8 = scmp.ne.s32.totalorder %s1217_s3, %s916_s27  ;;  %p920_p9 = scmp.lt.u32.totalorder %s916_s27, %s1217_s3 }
  0x16   :  { %p922_p10 = pnand %p920_p9, %p917_p8 }
  0x18   :  { %925 = shalt.err (!%p922_p10)
}
  0x19   :  { %s926_s13 = scalar_lea.vmem %s1028_s12, 1024  ;;  %p931_p12 = scmp.lt.s32.totalorder %s1028_s12, %s1028_s12 }
  0x1a   :  { %p927_p11 = scmp.ne.s32.totalorder %s1028_s12, %s926_s13  ;;  %p932_p13 = scmp.lt.s32.totalorder %s926_s13, %s926_s13 }
  0x1c   :  { %p933_p0 = por %p932_p13, %p931_p12 }
  0x1e   :  { %p934_p1 = pnand %p933_p0, %p927_p11 }
  0x20   :  { %937 = shalt.err (!%p934_p1)
}
  0x21   :  { %33 = dma.hbm_to_vmem [thread:$0]  %s1217_s3, 1024, %s1028_s12, [#allocation4], %s966_s21, %s966_s21, %s967_s22  }
  0x22   :  { %s968_s14 = smov [#allocation7]   ;;  %s938_s18 = scalar_lea.hbm %s1221_s7, 1024 }
  0x23   :  { %s55_s15 = sshll.u32 %s968_s14, 4  ;;  %p939_p2 = scmp.ne.s32.totalorder %s1221_s7, %s938_s18  ;;  %s56_s15 = int_to_ptr.vmem [resolvable:$true] %s55_s15 }
  0x24   :  { %p942_p3 = scmp.lt.u32.totalorder %s938_s18, %s1221_s7 }
  0x26   :  { %p944_p4 = pnand %p942_p3, %p939_p2 }
  0x28   :  { %947 = shalt.err (!%p944_p4)
}
  0x29   :  { %s948_s25 = scalar_lea.vmem %s56_s15, 1024  ;;  %p953_p6 = scmp.lt.s32.totalorder %s56_s15, %s56_s15 }
  0x2a   :  { %p949_p5 = scmp.ne.s32.totalorder %s56_s15, %s948_s25  ;;  %p954_p7 = scmp.lt.s32.totalorder %s948_s25, %s948_s25 }
  0x2c   :  { %p955_p8 = por %p954_p7, %p953_p6 }
  0x2e   :  { %p956_p9 = pnand %p955_p8, %p949_p5 }
  0x30   :  { %959 = shalt.err (!%p956_p9)
}
  0x31   :  { %61 = dma.hbm_to_vmem [thread:$0]  %s1221_s7, 1024, %s56_s15, [#allocation6], %s966_s21, %s966_s21, %s967_s22  }
  0x32   :  { %960 = dma.done.wait [#allocation4], 1024  }
  0x33   :  { %961 = vsyncadd [#allocation4], 4294966272 }
  0x34   :  { %962 = dma.done.wait [#allocation6], 2048  }
  0x35   :  { %963 = vsyncadd [#allocation6], 4294965248  ;;  %v969_v0 = vmov 0   ;;  %v78_v1 = vld [vmem:[%s1214_s0] sm:$0xff]  ;;  %v79_v2 = vld [vmem:[%s1214_s0 + $0x8] sm:$0xff]  ;;  %v970_v4 = vmov 0.0  }
  0x36   :  { %845 = vset.pattern.permute.xlu0 %v969_v0  ;;  %v846_v3 = vld [vmem:[#allocation3] sm:$0xff]   ;;  %763 = vmatprep.subr.bf16.mxu0 %v970_v4  ;;  %v847_v5 = vld [vmem:[#allocation3 + $0x8] sm:$0xff]   ;;  %v848_v6 = vld [vmem:[#allocation3 + $0x10] sm:$0xff]   ;;  %vm971_vm0 = vmmov 0   ;;  %v972_v36 = vmov 683565275  }
  0x37   :  { %83 = vperm.xlu0 %845, %v78_v1   ;;  %783 = vmatprep.subr.bf16.mxu1 %v970_v4  ;;  %v849_v7 = vld [vmem:[#allocation3 + $0x18] sm:$0xff]   ;;  %v850_v8 = vld [vmem:[#allocation3 + $0x20] sm:$0xff]   ;;  %v851_v9 = vld [vmem:[#allocation3 + $0x28] sm:$0xff]   ;;  %v973_v40 = vmov 2475754826  }
  0x38   :  { %764 = vmatpush3.bf16.msra.mxu0 %v846_v3  ;;  %779 = vmatprep.mubr.msk.bf16.mxu0 %vm971_vm0, %v970_v4  ;;  %v852_v10 = vld [vmem:[#allocation3 + $0x30] sm:$0xff]   ;;  %v853_v11 = vld [vmem:[#allocation3 + $0x38] sm:$0xff]   ;;  %v695_v12 = vld [vmem:[%s1215_s1] ss:$0 sm:$0xff]  ;;  %v974_v42 = vmov 2131351028  }
  0x39   :  { %765 = vmatprep.subr.bf16.mxu0 %v970_v4  ;;  %799 = vmatprep.mubr.msk.bf16.mxu1 %vm971_vm0, %v970_v4  ;;  %v696_v13 = vld [vmem:[%s1216_s2] ss:$0 sm:$0xff]  ;;  %v975_v44 = vmov 2102212464   ;;  %v976_v46 = vmov 920167782  }
  0x3a   :  { %v977_v53 = vmov 1326507024  }
  0x3b   :  { %88 = vperm.xlu0 %845, %v79_v2  }
  0x3c   :  { %766 = vmatpush3.bf16.msra.mxu0 %v847_v5 }
  0x3d   :  { %767 = vmatprep.subr.bf16.mxu0 %v970_v4 }
  0x40   :  { %768 = vmatpush3.bf16.msra.mxu0 %v848_v6 }
  0x41   :  { %769 = vmatprep.subr.bf16.mxu0 %v970_v4 }
  0x44   :  { %770 = vmatpush3.bf16.msra.mxu0 %v849_v7 }
  0x45   :  { %771 = vmatprep.subr.bf16.mxu0 %v970_v4 }
  0x48   :  { %772 = vmatpush3.bf16.msra.mxu0 %v850_v8 }
  0x49   :  { %773 = vmatprep.subr.bf16.mxu0 %v970_v4 }
  0x4c   :  { %774 = vmatpush3.bf16.msra.mxu0 %v851_v9 }
  0x4d   :  { %775 = vmatprep.subr.bf16.mxu0 %v970_v4 }
  0x50   :  { %776 = vmatpush3.bf16.msra.mxu0 %v852_v10 }
  0x51   :  { %777 = vmatprep.subr.bf16.mxu0 %v970_v4 }
  0x54   :  { %778 = vmatpush3.bf16.msra.mxu0 %v853_v11 }
  0x55   :  { %803 = vmatprep.subr.bf16.mxu0 %v970_v4 }
  0xb6   :  { %v84_v14 = vpop.permute.xlu0 %83 }
  0xb7   :  { %v97_v15 = vmul.f32 %v695_v12, %v84_v14 }
  0xb9   :  { %v1106_v16 = vadd.f32 %v696_v13, %v97_v15 }
  0xba   :  { %v89_v17 = vpop.permute.xlu0 %88 }
  0xbb   :  { %v108_v18 = vand.u32 2147483647, %v1106_v16  ;;  %v111_v19 = vand.u32 2139095040, %v1106_v16  ;;  %v98_v20 = vmul.f32 %v695_v12, %v89_v17  ;;  %vm110_vm15 = vcmp.lt.s32.totalorder %v1106_v16, 0 }
  0xbd   :  { %v112_v21 = vshrl.u32 %v111_v19, 23  ;;  %v1110_v22 = vadd.f32 %v696_v13, %v98_v20  ;;  %v115_v23 = vand.u32 8388607, %v108_v18 }
  0xbf   :  { %v697_v24 = vadd.s32 4294967169, %v112_v21  ;;  %v215_v25 = vand.u32 2139095040, %v1110_v22  ;;  %v116_v27 = vor.u32 8388608, %v115_v23  ;;  %v212_v29 = vand.u32 2147483647, %v1110_v22 }
  0xc1   :  { %v118_v26 = vadd.s32 1, %v697_v24  ;;  %v216_v28 = vshrl.u32 %v215_v25, 23  ;;  %v1116_v34 = vshll.u32 %v116_v27, 8  ;;  %v219_v38 = vand.u32 8388607, %v212_v29 }
  0xc3   :  { %vm119_vm1 = vcmp.gt.s32.totalorder %v118_v26, 0  ;;  %v701_v31 = vadd.s32 4294967169, %v216_v28  ;;  %v220_v5 = vor.u32 8388608, %v219_v38 }
  0xc4   :  { %v120_v30 = vsel %vm119_vm1, %v118_v26, 0  ;;  %vm1164_vm1 = vcmp.le.f32.partialorder %v108_v18, 0.7853982 }
  0xc5   :  { %v121_v32 = vshrl.u32 %v120_v30, 5  ;;  %v122_v33 = vand.u32 31, %v120_v30  ;;  %v222_v39 = vadd.s32 1, %v701_v31  ;;  %v260_v20 = vshll.u32 %v220_v5, 8 }
  0xc7   :  { %v123_v35 = vsub.s32 32, %v122_v33  ;;  %v125_v37 = vshll.u32 %v972_v36, %v122_v33  ;;  %v128_v41 = vshll.u32 %v973_v40, %v122_v33  ;;  %v131_v43 = vshll.u32 %v974_v42, %v122_v33 }
  0xc8   :  { %v134_v45 = vshll.u32 %v975_v44, %v122_v33  ;;  %v137_v47 = vshll.u32 %v976_v46, %v122_v33  ;;  %vm140_vm2 = vcmp.lt.s32.totalorder %v121_v32, 1  ;;  %vm142_vm3 = vcmp.lt.s32.totalorder %v121_v32, 3 }
  0xc9   :  { %v126_v48 = vshrl.u32 %v973_v40, %v123_v35  ;;  %v129_v49 = vshrl.u32 %v974_v42, %v123_v35  ;;  %v132_v50 = vshrl.u32 %v975_v44, %v123_v35  ;;  %v124_v51 = vshrl.u32 %v972_v36, %v123_v35 }
  0xca   :  { %v135_v52 = vshrl.u32 %v976_v46, %v123_v35  ;;  %v138_v54 = vshrl.u32 %v977_v53, %v123_v35  ;;  %vm223_vm4 = vcmp.gt.s32.totalorder %v222_v39, 0  ;;  %vm143_vm5 = vcmp.lt.s32.totalorder %v121_v32, 4 }
  0xcb   :  { %v127_v55 = vor.u32 %v126_v48, %v125_v37  ;;  %v130_v56 = vor.u32 %v129_v49, %v128_v41  ;;  %v133_v57 = vor.u32 %v132_v50, %v131_v43  ;;  %v224_v60 = vsel %vm223_vm4, %v222_v39, 0 }
  0xcc   :  { %v136_v58 = vor.u32 %v135_v52, %v134_v45  ;;  %v139_v59 = vor.u32 %v138_v54, %v137_v47  ;;  %vm141_vm6 = vcmp.lt.s32.totalorder %v121_v32, 2  ;;  %v226_v8 = vand.u32 31, %v224_v60 }
  0xcd   :  { %v144_v61 = vsel %vm140_vm2, %v124_v51, %v127_v55  ;;  %v145_v62 = vsel %vm143_vm5, %v133_v57, 2102212464  ;;  %v148_v63 = vsel %vm140_vm2, %v127_v55, %v130_v56  ;;  %v152_v0 = vsel %vm140_vm2, %v130_v56, %v133_v57 }
  0xce   :  { %v146_v1 = vsel %vm142_vm3, %v130_v56, %v145_v62  ;;  %v149_v2 = vsel %vm143_vm5, %v136_v58, 920167782  ;;  %v153_v3 = vsel %vm143_vm5, %v139_v59, 1326507024  ;;  %v225_v17 = vshrl.u32 %v224_v60, 5 }
  0xcf   :  { %v150_v6 = vsel %vm142_vm3, %v133_v57, %v149_v2  ;;  %v154_v7 = vsel %vm142_vm3, %v136_v58, %v153_v3  ;;  %v147_v9 = vsel %vm141_vm6, %v144_v61, %v146_v1  ;;  %v227_v19 = vsub.s32 32, %v226_v8 }
  0xd0   :  { %v151_v10 = vsel %vm141_vm6, %v148_v63, %v150_v6  ;;  %v155_v11 = vsel %vm141_vm6, %v152_v0, %v154_v7  ;;  %v163_v21 = vmul.u32 %v1116_v34, %v147_v9  ;;  %v229_v23 = vshll.u32 %v972_v36, %v226_v8 }
  0xd1   :  { %v1129_v12 = vmul.u32.u64.low %v1116_v34, %v155_v11  ;;  %v1130_v13 = vmul.u32.u64.high %v1116_v34, %v155_v11, %v1129_v12  ;;  %v1133_v14 = vmul.u32.u64.low %v1116_v34, %v151_v10  ;;  %v1134_v15 = vmul.u32.u64.high %v1116_v34, %v151_v10, %v1133_v14 }
  0xd2   :  { %v232_v24 = vshll.u32 %v973_v40, %v226_v8  ;;  %v235_v25 = vshll.u32 %v974_v42, %v226_v8  ;;  %v230_v26 = vshrl.u32 %v973_v40, %v227_v19  ;;  %v233_v27 = vshrl.u32 %v974_v42, %v227_v19 }
  0xd3   :  { %v236_v28 = vshrl.u32 %v975_v44, %v227_v19  ;;  %v238_v30 = vshll.u32 %v975_v44, %v226_v8  ;;  %vm165_vm7 = vc.u32 %v1130_v13, %v1133_v14  ;;  %v166_v31 = vadd.s32 1, %v1134_v15 }
  0xd4   :  { %v239_v32 = vshrl.u32 %v976_v46, %v227_v19  ;;  %v241_v33 = vshll.u32 %v976_v46, %v226_v8  ;;  %v231_v35 = vor.u32 %v230_v26, %v229_v23  ;;  %v234_v37 = vor.u32 %v233_v27, %v232_v24 }
  0xd5   :  { %v237_v38 = vor.u32 %v236_v28, %v235_v25  ;;  %v242_v39 = vshrl.u32 %v977_v53, %v227_v19  ;;  %v167_v34 = vsel %vm165_vm7, %v166_v31, %v1134_v15  ;;  %vm244_vm8 = vcmp.lt.s32.totalorder %v225_v17, 1 }
  0xd6   :  { %v240_v41 = vor.u32 %v239_v32, %v238_v30  ;;  %vm247_vm9 = vcmp.lt.s32.totalorder %v225_v17, 4  ;;  %v168_v40 = vadd.s32 %v167_v34, %v163_v21  ;;  %vm246_vm10 = vcmp.lt.s32.totalorder %v225_v17, 3 }
  0xd7   :  { %v243_v42 = vor.u32 %v242_v39, %v241_v33  ;;  %v249_v43 = vsel %vm247_vm9, %v237_v38, 2102212464  ;;  %v228_v44 = vshrl.u32 %v972_v36, %v227_v19  ;;  %v252_v45 = vsel %vm244_vm8, %v231_v35, %v234_v37 }
  0xd8   :  { %v253_v47 = vsel %vm247_vm9, %v240_v41, 920167782  ;;  %v256_v48 = vsel %vm244_vm8, %v234_v37, %v237_v38  ;;  %v169_v49 = vadd.s32 536870912, %v168_v40  ;;  %vm245_vm11 = vcmp.lt.s32.totalorder %v225_v17, 2 }
  0xd9   :  { %v254_v46 = vsel %vm246_vm10, %v237_v38, %v253_v47  ;;  %v257_v50 = vsel %vm247_vm9, %v243_v42, 1326507024  ;;  %v248_v51 = vsel %vm244_vm8, %v228_v44, %v231_v35  ;;  %v250_v52 = vsel %vm246_vm10, %v234_v37, %v249_v43 }
  0xda   :  { %v255_v53 = vsel %vm245_vm11, %v252_v45, %v254_v46  ;;  %v258_v54 = vsel %vm246_vm10, %v240_v41, %v257_v50  ;;  %v1144_v55 = vshrl.u32 %v169_v49, 30  ;;  %v251_v61 = vsel %vm245_vm11, %v248_v51, %v250_v52  ;;  %v863_v45 = vld [vmem:[#allocation7 + $0x8] sm:$0xff]  }
  0xdb   :  { %v259_v56 = vsel %vm245_vm11, %v256_v48, %v258_v54  ;;  %v1146_v57 = vmul.u32.u64.low %v260_v20, %v255_v53  ;;  %v1147_v58 = vmul.u32.u64.high %v260_v20, %v255_v53, %v1146_v57  ;;  %v267_v0 = vmul.u32 %v260_v20, %v251_v61 }
  0xdc   :  { %v1149_v59 = vmul.u32.u64.low %v260_v20, %v259_v56  ;;  %v1150_v60 = vmul.u32.u64.high %v260_v20, %v259_v56, %v1149_v59  ;;  %v171_v36 = vshll.u32 %v1144_v55, 30  ;;  %v164_v15 = vadd.s32 %v1133_v14, %v1130_v13 }
  0xdd   :  { %v270_v63 = vadd.s32 1, %v1147_v58  ;;  %v194_v49 = vsub.s32 4, %v1144_v55  ;;  %vm214_vm2 = vcmp.lt.s32.totalorder %v1110_v22, 0  ;;  %vm213_vm3 = vcmp.le.f32.partialorder %v212_v29, 0.7853982 }
  0xde   :  { %v172_v62 = vsub.s32 %v168_v40, %v171_v36  ;;  %vm269_vm12 = vc.u32 %v1150_v60, %v1146_v57  ;;  %v268_v38 = vadd.s32 %v1146_v57, %v1150_v60  ;;  %vm200_vm10 = vweird.f32 %v1106_v16 }
  0xdf   :  { %v271_v2 = vsel %vm269_vm12, %v270_v63, %v1147_v58  ;;  %v195_v18 = vsel %vm110_vm15, %v194_v49, %v1144_v55  ;;  %vm304_vm11 = vweird.f32 %v1110_v22  ;;  %v866_v49 = vld [vmem:[#allocation7 + $0x20] sm:$0xff]  }
  0xe0   :  { %v174_v1 = vsub.s32 0, %v172_v62  ;;  %v272_v3 = vadd.s32 %v271_v2, %v267_v0  ;;  %v197_v56 = vsel %vm1164_vm1, 0, %v195_v18 }
  0xe1   :  { %v201_v59 = vadd.s32 3, %v197_v56 }
  0xe2   :  { %v698_v5 = vmin.u32 %v174_v1, %v172_v62  ;;  %v273_v6 = vadd.s32 536870912, %v272_v3 }
  0xe4   :  { %v176_v7 = vclz %v698_v5  ;;  %v274_v8 = vshrl.u32 %v273_v6, 30 }
  0xe6   :  { %v699_v9 = vadd.s32 4294967294, %v176_v7  ;;  %v275_v10 = vshll.u32 %v274_v8, 30  ;;  %v298_v52 = vsub.s32 4, %v274_v8 }
  0xe8   :  { %vm700_vm13 = vcmp.lt.s32.totalorder %v699_v9, 0  ;;  %v276_v12 = vsub.s32 %v272_v3, %v275_v10  ;;  %v299_v57 = vsel %vm214_vm2, %v298_v52, %v274_v8  ;;  %v716_v52 = vld [vmem:[%s1220_s6] ss:$0 sm:$0xff] }
  0xe9   :  { %v179_v11 = vsel %vm700_vm13, 0, %v699_v9  ;;  %v301_v60 = vsel %vm213_vm3, 0, %v299_v57 }
  0xea   :  { %v180_v17 = vsub.s32 32, %v179_v11  ;;  %v184_v19 = vsub.s32 4294967266, %v179_v11  ;;  %v278_v20 = vsub.s32 0, %v276_v12  ;;  %v181_v21 = vshll.u32 %v172_v62, %v179_v11 }
  0xeb   :  { %v305_v55 = vadd.s32 3, %v301_v60  ;;  %v202_v62 = vand.u32 3, %v201_v59 }
  0xec   :  { %v182_v23 = vshrl.u32 %v164_v15, %v180_v17  ;;  %v185_v24 = vadd.s32 127, %v184_v19  ;;  %v702_v25 = vmin.u32 %v278_v20, %v276_v12  ;;  %v854_v19 = vld [vmem:[#allocation5] sm:$0xff]   ;;  %v855_v20 = vld [vmem:[#allocation5 + $0x8] sm:$0xff]  }
  0xed   :  { %v306_v1 = vand.u32 3, %v305_v55  ;;  %vm204_vm4 = vcmp.eq.s32.totalorder %v202_v62, 0  ;;  %vm207_vm5 = vcmp.eq.s32.totalorder %v202_v62, 2  ;;  %vm203_vm6 = vcmp.lt.s32.totalorder %v202_v62, 2  ;;  %784 = vmatpush3.bf16.msra.mxu1 %v854_v19 }
  0xee   :  { %v183_v26 = vor.u32 %v182_v23, %v181_v21  ;;  %v186_v27 = vshll.u32 %v185_v24, 23  ;;  %v280_v28 = vclz %v702_v25  ;;  %785 = vmatprep.subr.bf16.mxu1 %v970_v4  ;;  %v856_v21 = vld [vmem:[#allocation5 + $0x10] sm:$0xff]   ;;  %v859_v23 = vld [vmem:[#allocation5 + $0x28] sm:$0xff]   ;;  %v861_v25 = vld [vmem:[#allocation5 + $0x38] sm:$0xff]  }
  0xef   :  { %vm311_vm7 = vcmp.eq.s32.totalorder %v306_v1, 2  ;;  %vm308_vm8 = vcmp.eq.s32.totalorder %v306_v1, 0  ;;  %vm307_vm9 = vcmp.lt.s32.totalorder %v306_v1, 2  ;;  %v860_v24 = vld [vmem:[#allocation5 + $0x30] sm:$0xff]  }
  0xf0   :  { %v187_v30 = vor.u32 4788187, %v186_v27  ;;  %v703_v31 = vadd.s32 4294967294, %v280_v28  ;;  %v190_v33 = vcvt.s32.f32 %v183_v26  ;;  %v705_v26 = vld [vmem:[%s1218_s4] ss:$0 sm:$0xff] }
  0xf1   :  { %786 = vmatpush3.bf16.msra.mxu1 %v855_v20 }
  0xf2   :  { %v188_v32 = vand.u32 2147483647, %v187_v30  ;;  %vm704_vm14 = vcmp.lt.s32.totalorder %v703_v31, 0  ;;  %787 = vmatprep.subr.bf16.mxu1 %v970_v4 }
  0xf3   :  { %v283_v37 = vsel %vm704_vm14, 0, %v703_v31 }
  0xf4   :  { %v191_v35 = vmul.f32 %v190_v33, %v188_v32  ;;  %v284_v13 = vsub.s32 32, %v283_v37  ;;  %v288_v14 = vsub.s32 4294967266, %v283_v37  ;;  %v285_v34 = vshll.u32 %v276_v12, %v283_v37 }
  0xf5   :  { %788 = vmatpush3.bf16.msra.mxu1 %v856_v21 }
  0xf6   :  { %v192_v39 = vxor.u32 2147483648, %v191_v35  ;;  %v286_v41 = vshrl.u32 %v268_v38, %v284_v13  ;;  %v289_v40 = vadd.s32 127, %v288_v14  ;;  %789 = vmatprep.subr.bf16.mxu1 %v970_v4 }
  0xf8   :  { %v193_v42 = vsel %vm110_vm15, %v192_v39, %v191_v35  ;;  %v287_v43 = vor.u32 %v286_v41, %v285_v34  ;;  %v290_v44 = vshll.u32 %v289_v40, 23 }
  0xf9   :  { %v196_v47 = vsel %vm1164_vm1, %v1106_v16, %v193_v42  ;;  %v857_v16 = vld [vmem:[#allocation5 + $0x18] sm:$0xff]  }
  0xfa   :  { %v291_v48 = vor.u32 4788187, %v290_v44  ;;  %v294_v50 = vcvt.s32.f32 %v287_v43  ;;  %870 = vcosq.f32 %v196_v47  ;;  %790 = vmatpush3.bf16.msra.mxu1 %v857_v16  ;;  %v862_v44 = vld [vmem:[#allocation7] sm:$0xff]  }
  0xfb   :  { %872 = vsinq.f32 %v196_v47  ;;  %791 = vmatprep.subr.bf16.mxu1 %v970_v4  ;;  %v864_v47 = vld [vmem:[#allocation7 + $0x10] sm:$0xff]  }
  0xfc   :  { %v292_v46 = vand.u32 2147483647, %v291_v48  ;;  %v865_v48 = vld [vmem:[#allocation7 + $0x18] sm:$0xff]  }
  0xfe   :  { %v295_v51 = vmul.f32 %v294_v50, %v292_v46  ;;  %v867_v46 = vld [vmem:[#allocation7 + $0x28] sm:$0xff]   ;;  %v868_v50 = vld [vmem:[#allocation7 + $0x30] sm:$0xff]  }
 0x100   :  { %v296_v53 = vxor.u32 2147483648, %v295_v51 }
 0x102   :  { %v297_v54 = vsel %vm214_vm2, %v296_v53, %v295_v51  ;;  %v869_v51 = vld [vmem:[#allocation7 + $0x38] sm:$0xff]  }
 0x103   :  { %v300_v58 = vsel %vm213_vm3, %v1110_v22, %v297_v54  ;;  %v858_v22 = vld [vmem:[#allocation5 + $0x20] sm:$0xff]  }
 0x104   :  { %874 = vcosq.f32 %v300_v58  ;;  %v871_v36 = vpop.eup %870  ;;  %792 = vmatpush3.bf16.msra.mxu1 %v858_v22 }
 0x105   :  { %876 = vsinq.f32 %v300_v58  ;;  %v873_v61 = vpop.eup %872  ;;  %v208_v0 = vxor.u32 2147483648, %v871_v36  ;;  %793 = vmatprep.subr.bf16.mxu1 %v970_v4 }
 0x106   :  { %v205_v63 = vxor.u32 2147483648, %v873_v61 }
 0x107   :  { %v209_v5 = vsel %vm207_vm5, %v208_v0, %v873_v61 }
 0x108   :  { %v206_v3 = vsel %vm204_vm4, %v871_v36, %v205_v63  ;;  %794 = vmatpush3.bf16.msra.mxu1 %v859_v23 }
 0x109   :  { %v210_v8 = vsel %vm203_vm6, %v206_v3, %v209_v5  ;;  %795 = vmatprep.subr.bf16.mxu1 %v970_v4  ;;  %v727_v3 = vld [vmem:[%s1222_s8] ss:$0 sm:$0xff] }
 0x10a   :  { %v211_v12 = vsel %vm200_vm10, nan, %v210_v8 }
 0x10c   :  { %796 = vmatpush3.bf16.msra.mxu1 %v860_v24 }
 0x10d   :  { %797 = vmatprep.subr.bf16.mxu1 %v970_v4 }
 0x10e   :  { %v875_v2 = vpop.eup %874 }
 0x10f   :  { %v877_v29 = vpop.eup %876  ;;  %v312_v6 = vxor.u32 2147483648, %v875_v2 }
 0x110   :  { %v309_v7 = vxor.u32 2147483648, %v877_v29  ;;  %798 = vmatpush3.bf16.msra.mxu1 %v861_v25 }
 0x111   :  { %v313_v9 = vsel %vm311_vm7, %v312_v6, %v877_v29 }
 0x112   :  { %v310_v10 = vsel %vm308_vm8, %v875_v2, %v309_v7 }
 0x113   :  { %v314_v11 = vsel %vm307_vm9, %v310_v10, %v313_v9 }
 0x114   :  { %v315_v15 = vsel %vm304_vm11, nan, %v314_v11 }
 0x115   :  { %v316_v17 = vpack.c.bf16 %v315_v15, %v211_v12 }
 0x117   :  { %780 = vmatmul.mubr.bf16.vlgmr.msra.gmra.mrb[0].mxu0 %v316_v17 }
 0x118   :  { %819 = vmatprep.mubr.msk.bf16.mxu0 %vm971_vm0, %v970_v4  ;;  %804 = vmatpush3.bf16.msra.mxu0 %v862_v44 }
 0x119   :  { %805 = vmatprep.subr.bf16.mxu0 %v970_v4 }
 0x11c   :  { %806 = vmatpush3.bf16.msra.mxu0 %v863_v45 }
 0x11d   :  { %807 = vmatprep.subr.bf16.mxu0 %v970_v4 }
 0x120   :  { %808 = vmatpush3.bf16.msra.mxu0 %v864_v47 }
 0x121   :  { %809 = vmatprep.subr.bf16.mxu0 %v970_v4 }
 0x124   :  { %810 = vmatpush3.bf16.msra.mxu0 %v865_v48 }
 0x125   :  { %811 = vmatprep.subr.bf16.mxu0 %v970_v4 }
 0x128   :  { %812 = vmatpush3.bf16.msra.mxu0 %v866_v49 }
 0x129   :  { %813 = vmatprep.subr.bf16.mxu0 %v970_v4 }
 0x12c   :  { %814 = vmatpush3.bf16.msra.mxu0 %v867_v46 }
 0x12d   :  { %815 = vmatprep.subr.bf16.mxu0 %v970_v4 }
 0x130   :  { %816 = vmatpush3.bf16.msra.mxu0 %v868_v50 }
 0x131   :  { %817 = vmatprep.subr.bf16.mxu0 %v970_v4 }
 0x134   :  { %818 = vmatpush3.bf16.msra.mxu0 %v869_v51 }
 0x1ea   :  { %v422_v27 = vpop.f32.mrb[0].mxu0 }
 0x1eb   :  { %v423_v28 = vadd.f32 %v705_v26, %v422_v27  ;;  %v781_v30 = vpop.f32.mrb[1].mxu0 }
 0x1ec   :  { %v425_v31 = vpop.f32.mrb[2].mxu0 }
 0x1ed   :  { %v714_v32 = vmul.f32 -1.442695, %v423_v28  ;;  %v426_v33 = vadd.f32 %v705_v26, %v425_v31  ;;  %v782_v35 = vpop.f32.mrb[3].mxu0 }
 0x1ef   :  { %878 = vpow2.f32 %v714_v32  ;;  %v715_v37 = vmul.f32 -1.442695, %v426_v33 }
 0x1f1   :  { %880 = vpow2.f32 %v715_v37 }
 0x1f9   :  { %v879_v38 = vpop.eup %878 }
 0x1fa   :  { %v435_v13 = vadd.f32 1.0, %v879_v38 }
 0x1fb   :  { %v881_v14 = vpop.eup %880 }
 0x1fc   :  { %882 = vrcp.f32 %v435_v13  ;;  %v436_v39 = vadd.f32 1.0, %v881_v14 }
 0x1fe   :  { %884 = vrcp.f32 %v436_v39 }
 0x206   :  { %v883_v34 = vpop.eup %882 }
 0x207   :  { %v441_v40 = vmul.f32 %v883_v34, %v423_v28 }
 0x208   :  { %v885_v41 = vpop.eup %884 }
 0x209   :  { %v442_v42 = vmul.f32 %v885_v41, %v426_v33 }
 0x20b   :  { %v443_v43 = vpack.c.bf16 %v442_v42, %v441_v40 }
 0x20d   :  { %800 = vmatmul.mubr.bf16.vlgmr.msra.gmra.mrb[0].mxu1 %v443_v43 }
 0x2e0   :  { %v549_v18 = vpop.f32.mrb[0].mxu1 }
 0x2e1   :  { %v550_v53 = vadd.f32 %v716_v52, %v549_v18  ;;  %v801_v54 = vpop.f32.mrb[1].mxu1 }
 0x2e2   :  { %v552_v56 = vpop.f32.mrb[2].mxu1 }
 0x2e3   :  { %v725_v57 = vmul.f32 -1.442695, %v550_v53  ;;  %v553_v58 = vadd.f32 %v716_v52, %v552_v56  ;;  %v802_v59 = vpop.f32.mrb[3].mxu1 }
 0x2e5   :  { %886 = vpow2.f32 %v725_v57  ;;  %v726_v60 = vmul.f32 -1.442695, %v553_v58 }
 0x2e7   :  { %888 = vpow2.f32 %v726_v60 }
 0x2ef   :  { %v887_v36 = vpop.eup %886 }
 0x2f0   :  { %v562_v61 = vadd.f32 1.0, %v887_v36 }
 0x2f1   :  { %v889_v55 = vpop.eup %888 }
 0x2f2   :  { %890 = vrcp.f32 %v562_v61  ;;  %v563_v4 = vadd.f32 1.0, %v889_v55 }
 0x2f4   :  { %892 = vrcp.f32 %v563_v4 }
 0x2fc   :  { %v891_v62 = vpop.eup %890 }
 0x2fd   :  { %v568_v0 = vmul.f32 %v891_v62, %v550_v53 }
 0x2fe   :  { %v893_v63 = vpop.eup %892 }
 0x2ff   :  { %v569_v1 = vmul.f32 %v893_v63, %v553_v58 }
 0x301   :  { %v574_v2 = vpack.c.bf16 %v569_v1, %v568_v0 }
 0x303   :  { %820 = vmatmul.mubr.bf16.vlgmr.msra.gmra.mrb[4].mxu0 %v574_v2 }
 0x3d6   :  { %v680_v5 = vpop.f32.mrb[4].mxu0 }
 0x3d7   :  { %v681_v29 = vadd.f32 %v727_v3, %v680_v5  ;;  %v821_v6 = vpop.f32.mrb[5].mxu0 }
 0x3d8   :  { %v683_v7 = vpop.f32.mrb[6].mxu0 }
 0x3d9   :  { %687 = vst [vmem:[%s1223_s9] sm:$0xff] %v681_v29  ;;  %v684_v8 = vadd.f32 %v727_v3, %v683_v7  ;;  %v822_v9 = vpop.f32.mrb[7].mxu0 }
 0x3db   :  { %688 = vst [vmem:[%s1223_s9 + $0x8] sm:$0xff] %v684_v8 }
 0x3dc   :  { %693 = vsyncpa [#allocation4], 1 }
 0x3dd   :  { %694 = vsyncpa [#allocation6], 1 }

</bundles_post_ra>
